<compile_context>
chip_gen: v5e
topology: v5e:2x2
jax: 0.10.0
libtpu: 0.0.40
codegen_flags: <defaults>
</compile_context>

<pallas_src>
import functools

import numpy as np
import jax
import jax.numpy as jnp
from jax import lax
from jax.experimental import pallas as pl
from jax.experimental.pallas import tpu as pltpu

_SUBLANES = 8          # f32 sublane count: keeps the column-sum MXU LHS sublane-dense
_EPS2 = 1e-24          # (F.normalize eps = 1e-12) squared
_NEG_HUGE = -3.0e38    # finite "-inf" init for the running column max (avoids inf-inf)


def _clip_loss_kernel(scale_ref, scene_ref, text_ref, out_ref,
                      scene_n_ref, colsum_ref, gmax_ref, sacc_ref,
                      *, block_rows, mxu_dtype):
    # scale_ref   : SMEM (1,)            exp(log(1/0.07)) parameter (clamped at 100)
    # scene_ref   : VMEM (B, D)          resident across all row blocks
    # text_ref    : VMEM (tm, D)         streamed row block
    # out_ref     : SMEM (1, 1)          scalar loss
    # scene_n_ref : VMEM (B, D)          normalized scene, mxu dtype (computed once)
    # colsum_ref  : VMEM (8, B) f32      column-sum accumulator (rows identical)
    # gmax_ref    : VMEM (1, 1) f32      running global max of the logits
    # sacc_ref    : SMEM (2,)  f32       [sum of row LSEs, sum of diagonal logits]
    i = pl.program_id(0)
    nblk = pl.num_programs(0)
    B = scene_ref.shape[0]

    scale = jnp.minimum(scale_ref[0], jnp.float32(100.0))

    # ---------- one-time init: normalize the resident scene, zero accumulators ----
    @pl.when(i == 0)
    def _init():
        scene = scene_ref[...].astype(jnp.float32)
        inv_s = lax.rsqrt(jnp.maximum(jnp.sum(scene * scene, axis=-1, keepdims=True),
                                      jnp.float32(_EPS2)))
        scene_n_ref[...] = (scene * inv_s).astype(mxu_dtype)
        colsum_ref[...] = jnp.zeros_like(colsum_ref)
        gmax_ref[...] = jnp.full((1, 1), jnp.float32(_NEG_HUGE), dtype=jnp.float32)
        sacc_ref[0] = jnp.float32(0.0)
        sacc_ref[1] = jnp.float32(0.0)

    # ---------- normalize this text block, fold the logit scale into it -----------
    text = text_ref[...].astype(jnp.float32)
    inv_t = lax.rsqrt(jnp.maximum(jnp.sum(text * text, axis=-1, keepdims=True),
                                  jnp.float32(_EPS2)))
    text_sn = (text * (scale * inv_t)).astype(mxu_dtype)          # (tm, D)

    scene_n = scene_n_ref[...]                                    # (B, D)

    # logits block = (scale * text_n) @ scene_n.T   -> contract last dims, no transpose
    logits = lax.dot_general(text_sn, scene_n,
                             dimension_numbers=(((1,), (1,)), ((), ())),
                             preferred_element_type=jnp.float32)  # (tm, B) f32

    # diagonal (matched-pair) logits of this block, from the SAME operands as the MXU
    row0 = pl.multiple_of(i * block_rows, block_rows)
    scene_diag = scene_n_ref[pl.ds(row0, block_rows), :].astype(jnp.float32)
    sacc_ref[1] = sacc_ref[1] + jnp.sum(text_sn.astype(jnp.float32) * scene_diag)

    # ---------- row-direction softmax stats (text -> scene CE) --------------------
    row_max = jnp.max(logits, axis=-1, keepdims=True)             # (tm, 1) lane reduce
    p = jnp.exp(logits - row_max)                                 # the only (tm, B) exp
    row_lse = jnp.log(jnp.sum(p, axis=-1, keepdims=True)) + row_max
    sacc_ref[0] = sacc_ref[0] + jnp.sum(row_lse)

    # ---------- online column-sum accumulation (scene -> text CE) -----------------
    g_old = gmax_ref[...]                                         # (1, 1)
    m_blk = jnp.max(row_max, axis=0, keepdims=True)               # (1, 1)
    g_new = jnp.maximum(g_old, m_blk)
    gmax_ref[...] = g_new

    # sum_i exp(L[i,j] - g) == exp(row_max - g)^T @ p : fold the rank-1 weight into
    # the MXU LHS (8 replicated rows) -> no (tm, B) elementwise pass, no temporary.
    v = jnp.exp(row_max - g_new)                                  # (tm, 1), values <= 1
    v_rows = jnp.broadcast_to(jnp.reshape(v, (1, block_rows)),
                              (_SUBLANES, block_rows))            # (8, tm)
    contrib = lax.dot_general(v_rows, p,
                              dimension_numbers=(((1,), (0,)), ((), ())),
                              preferred_element_type=jnp.float32)  # (8, B), rows equal
    colsum_ref[...] = colsum_ref[...] * jnp.exp(g_old - g_new) + contrib

    # ---------- finalize on the last row block -------------------------------------
    @pl.when(i == nblk - 1)
    def _fin():
        g = gmax_ref[...]                                         # (1, 1)
        col_lse_sum = jnp.sum(jnp.log(colsum_ref[0:1, :]) + g)    # sum_j log(cs_j)+B*g
        inv_b = jnp.float32(1.0 / B)
        diag = sacc_ref[1]
        t2s = (sacc_ref[0] - diag) * inv_b
        s2t = (col_lse_sum - diag) * inv_b
        out_ref[0, 0] = (t2s + s2t) * jnp.float32(0.5)


def _pick_block_rows(batch, target):
    """Largest power-of-two multiple of 8 that divides `batch` and is <= target."""
    best = 0
    cand = 8
    while cand <= min(batch, target):
        if batch % cand == 0:
            best = cand
        cand *= 2
    return best if best > 0 else batch   # fallback: single full-batch block


def text_scene_between_batch_loss(scene_embed, text_embed, logit_scale, *,
                                  block_rows=256, use_bf16_matmul=False):
    """scene_embed: [B, D], text_embed: [B, D], logit_scale: scalar (already exp'ed)."""
    B, D = scene_embed.shape
    assert text_embed.shape == (B, D)

    # TODO(synk): for lane-dense vregs on production shapes, pad B to a multiple of 8
    #             (16 for bf16) and D to a multiple of 128 (padded rows then need
    #             explicit masking out of the softmax / mean).
    # TODO(synk): tune block_rows per generation (v7x 64 MiB VMEM vs v5e/v6e 128 MiB).
    tm = _pick_block_rows(B, block_rows)
    nblk = B // tm

    mxu_dtype = jnp.bfloat16 if (use_bf16_matmul
                                 or scene_embed.dtype == jnp.bfloat16
                                 or text_embed.dtype == jnp.bfloat16) else jnp.float32

    mxu_bytes = jnp.dtype(mxu_dtype).itemsize
    scene_bytes = jnp.dtype(scene_embed.dtype).itemsize
    text_bytes = jnp.dtype(text_embed.dtype).itemsize

    # Scoped-VMEM budget derived from the actual tile sizes (+ headroom) instead of a
    # hard-coded constant; clamped well under v5e/v6e physical VMEM.
    vmem_need = (
        2 * B * D * scene_bytes            # resident scene input block
        + B * D * mxu_bytes                # normalized scene scratch
        + 2 * tm * D * text_bytes          # double-buffered text tile
        + _SUBLANES * B * 4                # column-sum accumulator
        + 6 * tm * B * 4                   # live (tm, B) logits / p temporaries
    )
    vmem_limit = int(min(max(2 * vmem_need, 8 * 1024 * 1024), 100 * 1024 * 1024))

    scale_arr = jnp.reshape(jnp.asarray(logit_scale, dtype=jnp.float32), (1,))

    kernel = functools.partial(_clip_loss_kernel, block_rows=tm, mxu_dtype=mxu_dtype)

    cost = pl.CostEstimate(
        flops=2 * B * B * D + 2 * _SUBLANES * B * B + 6 * B * D,
        transcendentals=B * B + 4 * B,
        bytes_accessed=B * D * (scene_bytes + text_bytes) + 8,
    )

    loss = pl.pallas_call(
        kernel,
        out_shape=jax.ShapeDtypeStruct((1, 1), jnp.float32),
        grid=(nblk,),
        in_specs=[
            pl.BlockSpec(memory_space=pltpu.MemorySpace.SMEM),         # logit_scale
            pl.BlockSpec((B, D), lambda i: (0, 0)),                    # scene: resident
            pl.BlockSpec((tm, D), lambda i: (i, 0)),                   # text: streamed
        ],
        out_specs=pl.BlockSpec(memory_space=pltpu.MemorySpace.SMEM),   # scalar loss
        scratch_shapes=[
            pltpu.VMEM((B, D), mxu_dtype),             # normalized scene (once)
            pltpu.VMEM((_SUBLANES, B), jnp.float32),   # column-sum accumulator
            pltpu.VMEM((1, 1), jnp.float32),           # running global max
            pltpu.SMEM((2,), jnp.float32),             # [sum row LSE, sum diag logits]
        ],
        compiler_params=pltpu.CompilerParams(
            # Row axis carries the column-sum / LSE accumulators -> sequential.
            dimension_semantics=("arbitrary",),
            vmem_limit_bytes=vmem_limit,
        ),
        cost_estimate=cost,
    )(scale_arr, scene_embed, text_embed)
    return loss[0, 0]


def _reference_loss(scene_embed, text_embed, logit_scale):
    """Pure-JAX reference matching the PyTorch forward (num_gpu == 1)."""
    scale = jnp.minimum(logit_scale, 100.0)
    s = scene_embed / jnp.maximum(
        jnp.linalg.norm(scene_embed, axis=-1, keepdims=True), 1e-12)
    t = text_embed / jnp.maximum(
        jnp.linalg.norm(text_embed, axis=-1, keepdims=True), 1e-12)
    t2s_logits = scale * t @ s.T
    s2t_logits = scale * s @ t.T
    labels = jnp.arange(t.shape[0])

    def ce(logits):
        lse = jax.scipy.special.logsumexp(logits, axis=-1)
        picked = logits[jnp.arange(logits.shape[0]), labels]
        return jnp.mean(lse - picked)

    return (ce(t2s_logits) + ce(s2t_logits)) / 2.0


if __name__ == "__main__":
    # Deterministic parameter init (as in __init__): exp(log(1/0.07))
    logit_scale = jnp.asarray(np.exp(np.log(1.0 / 0.07)), dtype=jnp.float32)

    key = jax.random.PRNGKey(0)
    k_scene, k_text = jax.random.split(key)
    B, D = 16, 32
    scene_embed = jax.random.normal(k_scene, (B, D), dtype=jnp.float32)
    text_embed = jax.random.normal(k_text, (B, D), dtype=jnp.float32)

    # block_rows=8 -> grid=(2,): exercises the streamed-text / online column-LSE path.
    loss = text_scene_between_batch_loss(scene_embed, text_embed, logit_scale,
                                         block_rows=8)
    loss = jax.block_until_ready(loss)

    ref = _reference_loss(scene_embed, text_embed, logit_scale)
    np.testing.assert_allclose(np.asarray(loss), np.asarray(ref), rtol=5e-5, atol=5e-5)

    print("KERNEL_OK")
</pallas_src>

<mosaic_0001>
module attributes {stable_mosaic.version = 11 : i64} {
  func.func @_clip_loss_kernel(%arg0: i32, %arg1: memref<1xf32, #tpu.memory_space<smem>>, %arg2: memref<16x32xf32, #tpu.memory_space<vmem>>, %arg3: memref<8x32xf32, #tpu.memory_space<vmem>>, %arg4: memref<1x1xf32, #tpu.memory_space<smem>>, %arg5: memref<16x32xf32, #tpu.memory_space<vmem>>, %arg6: memref<8x16xf32, #tpu.memory_space<vmem>>, %arg7: memref<1x1xf32, #tpu.memory_space<vmem>>, %arg8: memref<2xf32, #tpu.memory_space<smem>>) attributes {dimension_semantics = [#tpu.dimension_semantics<arbitrary>], iteration_bounds = array<i64: 2>, scalar_prefetch = 0 : i64, scratch_operands = 4 : i64, tpu.core_type = #tpu.core_type<tc>, window_params = [{transform_indices = @transform_0, window_bounds = array<i64: 1>}, {pipeline_mode = #tpu.pipeline_mode<synchronous>, transform_indices = @transform_1, window_bounds = array<i64: 16, 32>}, {transform_indices = @transform_2, window_bounds = array<i64: 8, 32>}, {transform_indices = @transform_3, window_bounds = array<i64: 1, 1>}]} {
    %c0 = arith.constant 0 : index
    %0 = memref.load %arg1[%c0] : memref<1xf32, #tpu.memory_space<smem>>
    %cst = arith.constant 1.000000e+02 : f32
    %1 = arith.minimumf %0, %cst : f32
    %c0_i32 = arith.constant 0 : i32
    %2 = arith.cmpi eq, %arg0, %c0_i32 : i32
    %3 = arith.extui %2 : i1 to i32
    %c0_i32_0 = arith.constant 0 : i32
    %4 = arith.cmpi ne, %3, %c0_i32_0 : i32
    scf.if %4 {
      %c0_27 = arith.constant 0 : index
      %c0_28 = arith.constant 0 : index
      %68 = vector.load %arg2[%c0_27, %c0_28] : memref<16x32xf32, #tpu.memory_space<vmem>>, vector<16x32xf32>
      %69 = arith.mulf %68, %68 : vector<16x32xf32>
      %cst_29 = arith.constant dense<0.000000e+00> : vector<16xf32>
      %70 = vector.multi_reduction <add>, %69, %cst_29 [1] : vector<16x32xf32> to vector<16xf32>
      %71 = vector.shape_cast %70 : vector<16xf32> to vector<16x1xf32>
      %cst_30 = arith.constant 1.000000e-24 : f32
      %72 = vector.broadcast %cst_30 : f32 to vector<16x1xf32>
      %73 = arith.maximumf %71, %72 : vector<16x1xf32>
      %74 = math.rsqrt %73 : vector<16x1xf32>
      %75 = vector.broadcast %74 : vector<16x1xf32> to vector<16x32xf32>
      %76 = arith.mulf %68, %75 : vector<16x32xf32>
      %c0_31 = arith.constant 0 : index
      %c0_32 = arith.constant 0 : index
      %77 = vector.load %arg5[%c0_31, %c0_32] : memref<16x32xf32, #tpu.memory_space<vmem>>, vector<16x32xf32>
      tpu.vector_store %arg5[%c0_31, %c0_32], %76 {strides = array<i32>} : memref<16x32xf32, #tpu.memory_space<vmem>>, vector<16x32xf32>,
      %cst_33 = arith.constant 0.000000e+00 : f32
      %78 = vector.broadcast %cst_33 : f32 to vector<8x16xf32>
      %c0_34 = arith.constant 0 : index
      %c0_35 = arith.constant 0 : index
      %79 = vector.load %arg6[%c0_34, %c0_35] : memref<8x16xf32, #tpu.memory_space<vmem>>, vector<8x16xf32>
      tpu.vector_store %arg6[%c0_34, %c0_35], %78 {strides = array<i32>} : memref<8x16xf32, #tpu.memory_space<vmem>>, vector<8x16xf32>,
      %cst_36 = arith.constant -3.000000e+38 : f32
      %80 = vector.broadcast %cst_36 : f32 to vector<1x1xf32>
      %c0_37 = arith.constant 0 : index
      %c0_38 = arith.constant 0 : index
      %81 = vector.load %arg7[%c0_37, %c0_38] : memref<1x1xf32, #tpu.memory_space<vmem>>, vector<1x1xf32>
      tpu.vector_store %arg7[%c0_37, %c0_38], %80 {strides = array<i32>} : memref<1x1xf32, #tpu.memory_space<vmem>>, vector<1x1xf32>,
      %cst_39 = arith.constant 0.000000e+00 : f32
      %c0_40 = arith.constant 0 : index
      %82 = memref.load %arg8[%c0_40] : memref<2xf32, #tpu.memory_space<smem>>
      memref.store %cst_39, %arg8[%c0_40] : memref<2xf32, #tpu.memory_space<smem>>
      %cst_41 = arith.constant 0.000000e+00 : f32
      %c1_42 = arith.constant 1 : index
      %83 = memref.load %arg8[%c1_42] : memref<2xf32, #tpu.memory_space<smem>>
      memref.store %cst_41, %arg8[%c1_42] : memref<2xf32, #tpu.memory_space<smem>>
    } else {
    }
    %c0_1 = arith.constant 0 : index
    %c0_2 = arith.constant 0 : index
    %5 = vector.load %arg3[%c0_1, %c0_2] : memref<8x32xf32, #tpu.memory_space<vmem>>, vector<8x32xf32>
    %6 = arith.mulf %5, %5 : vector<8x32xf32>
    %cst_3 = arith.constant dense<0.000000e+00> : vector<8xf32>
    %7 = vector.multi_reduction <add>, %6, %cst_3 [1] : vector<8x32xf32> to vector<8xf32>
    %8 = vector.shape_cast %7 : vector<8xf32> to vector<8x1xf32>
    %cst_4 = arith.constant 1.000000e-24 : f32
    %9 = vector.broadcast %cst_4 : f32 to vector<8x1xf32>
    %10 = arith.maximumf %8, %9 : vector<8x1xf32>
    %11 = math.rsqrt %10 : vector<8x1xf32>
    %12 = vector.broadcast %1 : f32 to vector<8x1xf32>
    %13 = arith.mulf %12, %11 : vector<8x1xf32>
    %14 = vector.broadcast %13 : vector<8x1xf32> to vector<8x32xf32>
    %15 = arith.mulf %5, %14 : vector<8x32xf32>
    %c0_5 = arith.constant 0 : index
    %c0_6 = arith.constant 0 : index
    %16 = vector.load %arg5[%c0_5, %c0_6] : memref<16x32xf32, #tpu.memory_space<vmem>>, vector<16x32xf32>
    %cst_7 = arith.constant dense<0.000000e+00> : vector<8x16xf32>
    %17 = tpu.matmul %15, %16, %cst_7 {dimension_numbers = #tpu.dot_dimension_numbers<[1], [1], [0], [0], [0, 0, 1, 0], [], []>} : vector<8x32xf32>, vector<16x32xf32>, vector<8x16xf32> -> vector<8x16xf32>
    %c8_i32 = arith.constant 8 : i32
    %18 = arith.muli %arg0, %c8_i32 : i32
    %19 = tpu.assume_multiple %18, 8 : i32
    %20 = arith.index_cast %19 : i32 to index
    %c0_8 = arith.constant 0 : index
    %21 = vector.load %arg5[%20, %c0_8] : memref<16x32xf32, #tpu.memory_space<vmem>>, vector<8x32xf32>
    %c1 = arith.constant 1 : index
    %22 = memref.load %arg8[%c1] : memref<2xf32, #tpu.memory_space<smem>>
    %23 = arith.mulf %15, %21 : vector<8x32xf32>
    %24 = vector.shape_cast %23 : vector<8x32xf32> to vector<1x8x32xf32>
    %cst_9 = arith.constant dense<0.000000e+00> : vector<1xf32>
    %25 = vector.multi_reduction <add>, %24, %cst_9 [1, 2] : vector<1x8x32xf32> to vector<1xf32>
    %26 = vector.shape_cast %25 : vector<1xf32> to vector<1x1x1xf32>
    %27 = vector.extract %26[0, 0, 0] : f32 from vector<1x1x1xf32>
    %28 = arith.addf %22, %27 : f32
    %c1_10 = arith.constant 1 : index
    %29 = memref.load %arg8[%c1_10] : memref<2xf32, #tpu.memory_space<smem>>
    memref.store %28, %arg8[%c1_10] : memref<2xf32, #tpu.memory_space<smem>>
    %cst_11 = arith.constant dense<0xFF800000> : vector<8xf32>
    %30 = vector.multi_reduction <maximumf>, %17, %cst_11 [1] : vector<8x16xf32> to vector<8xf32>
    %31 = vector.shape_cast %30 : vector<8xf32> to vector<8x1xf32>
    %32 = vector.broadcast %31 : vector<8x1xf32> to vector<8x16xf32>
    %33 = arith.subf %17, %32 : vector<8x16xf32>
    %34 = math.exp %33 : vector<8x16xf32>
    %cst_12 = arith.constant dense<0.000000e+00> : vector<8xf32>
    %35 = vector.multi_reduction <add>, %34, %cst_12 [1] : vector<8x16xf32> to vector<8xf32>
    %36 = vector.shape_cast %35 : vector<8xf32> to vector<8x1xf32>
    %37 = math.log %36 : vector<8x1xf32>
    %38 = arith.addf %37, %31 : vector<8x1xf32>
    %c0_13 = arith.constant 0 : index
    %39 = memref.load %arg8[%c0_13] : memref<2xf32, #tpu.memory_space<smem>>
    %40 = vector.shape_cast %38 : vector<8x1xf32> to vector<1x8x1xf32>
    %cst_14 = arith.constant dense<0.000000e+00> : vector<1xf32>
    %41 = vector.multi_reduction <add>, %40, %cst_14 [1, 2] : vector<1x8x1xf32> to vector<1xf32>
    %42 = vector.shape_cast %41 : vector<1xf32> to vector<1x1x1xf32>
    %43 = vector.extract %42[0, 0, 0] : f32 from vector<1x1x1xf32>
    %44 = arith.addf %39, %43 : f32
    %c0_15 = arith.constant 0 : index
    %45 = memref.load %arg8[%c0_15] : memref<2xf32, #tpu.memory_space<smem>>
    memref.store %44, %arg8[%c0_15] : memref<2xf32, #tpu.memory_space<smem>>
    %c0_16 = arith.constant 0 : index
    %c0_17 = arith.constant 0 : index
    %46 = vector.load %arg7[%c0_16, %c0_17] : memref<1x1xf32, #tpu.memory_space<vmem>>, vector<1x1xf32>
    %cst_18 = arith.constant dense<0xFF800000> : vector<1xf32>
    %47 = vector.multi_reduction <maximumf>, %31, %cst_18 [0] : vector<8x1xf32> to vector<1xf32>
    %48 = vector.shape_cast %47 : vector<1xf32> to vector<1x1xf32>
    %49 = arith.maximumf %46, %48 : vector<1x1xf32>
    %c0_19 = arith.constant 0 : index
    %c0_20 = arith.constant 0 : index
    %50 = vector.load %arg7[%c0_19, %c0_20] : memref<1x1xf32, #tpu.memory_space<vmem>>, vector<1x1xf32>
    tpu.vector_store %arg7[%c0_19, %c0_20], %49 {strides = array<i32>} : memref<1x1xf32, #tpu.memory_space<vmem>>, vector<1x1xf32>,
    %51 = vector.broadcast %49 : vector<1x1xf32> to vector<8x1xf32>
    %52 = arith.subf %31, %51 : vector<8x1xf32>
    %53 = math.exp %52 : vector<8x1xf32>
    %54 = vector.shape_cast %53 : vector<8x1xf32> to vector<1x8xf32>
    %55 = vector.shape_cast %54 : vector<1x8xf32> to vector<1x8xf32>
    %56 = vector.broadcast %55 : vector<1x8xf32> to vector<8x8xf32>
    %cst_21 = arith.constant dense<0.000000e+00> : vector<8x16xf32>
    %57 = tpu.matmul %56, %34, %cst_21 {dimension_numbers = #tpu.dot_dimension_numbers<[1], [0], [0], [1], [0, 0, 1, 1], [], []>} : vector<8x8xf32>, vector<8x16xf32>, vector<8x16xf32> -> vector<8x16xf32>
    %c0_22 = arith.constant 0 : index
    %c0_23 = arith.constant 0 : index
    %58 = vector.load %arg6[%c0_22, %c0_23] : memref<8x16xf32, #tpu.memory_space<vmem>>, vector<8x16xf32>
    %59 = arith.subf %46, %49 : vector<1x1xf32>
    %60 = math.exp %59 : vector<1x1xf32>
    %61 = vector.broadcast %60 : vector<1x1xf32> to vector<8x16xf32>
    %62 = arith.mulf %58, %61 : vector<8x16xf32>
    %63 = arith.addf %62, %57 : vector<8x16xf32>
    %c0_24 = arith.constant 0 : index
    %c0_25 = arith.constant 0 : index
    %64 = vector.load %arg6[%c0_24, %c0_25] : memref<8x16xf32, #tpu.memory_space<vmem>>, vector<8x16xf32>
    tpu.vector_store %arg6[%c0_24, %c0_25], %63 {strides = array<i32>} : memref<8x16xf32, #tpu.memory_space<vmem>>, vector<8x16xf32>,
    %c1_i32 = arith.constant 1 : i32
    %65 = arith.cmpi eq, %arg0, %c1_i32 : i32
    %66 = arith.extui %65 : i1 to i32
    %c0_i32_26 = arith.constant 0 : i32
    %67 = arith.cmpi ne, %66, %c0_i32_26 : i32
    scf.if %67 {
      %c0_27 = arith.constant 0 : index
      %c0_28 = arith.constant 0 : index
      %68 = vector.load %arg7[%c0_27, %c0_28] : memref<1x1xf32, #tpu.memory_space<vmem>>, vector<1x1xf32>
      %c0_29 = arith.constant 0 : index
      %c0_30 = arith.constant 0 : index
      %69 = vector.load %arg6[%c0_29, %c0_30] : memref<8x16xf32, #tpu.memory_space<vmem>>, vector<1x16xf32>
      %70 = math.log %69 : vector<1x16xf32>
      %71 = vector.broadcast %68 : vector<1x1xf32> to vector<1x16xf32>
      %72 = arith.addf %70, %71 : vector<1x16xf32>
      %73 = vector.shape_cast %72 : vector<1x16xf32> to vector<1x1x16xf32>
      %cst_31 = arith.constant dense<0.000000e+00> : vector<1xf32>
      %74 = vector.multi_reduction <add>, %73, %cst_31 [1, 2] : vector<1x1x16xf32> to vector<1xf32>
      %75 = vector.shape_cast %74 : vector<1xf32> to vector<1x1x1xf32>
      %76 = vector.extract %75[0, 0, 0] : f32 from vector<1x1x1xf32>
      %c1_32 = arith.constant 1 : index
      %77 = memref.load %arg8[%c1_32] : memref<2xf32, #tpu.memory_space<smem>>
      %c0_33 = arith.constant 0 : index
      %78 = memref.load %arg8[%c0_33] : memref<2xf32, #tpu.memory_space<smem>>
      %79 = arith.subf %78, %77 : f32
      %cst_34 = arith.constant 6.250000e-02 : f32
      %80 = arith.mulf %79, %cst_34 : f32
      %81 = arith.subf %76, %77 : f32
      %cst_35 = arith.constant 6.250000e-02 : f32
      %82 = arith.mulf %81, %cst_35 : f32
      %83 = arith.addf %80, %82 : f32
      %cst_36 = arith.constant 5.000000e-01 : f32
      %84 = arith.mulf %83, %cst_36 : f32
      %c0_37 = arith.constant 0 : index
      %c0_38 = arith.constant 0 : index
      %85 = memref.load %arg4[%c0_37, %c0_38] : memref<1x1xf32, #tpu.memory_space<smem>>
      memref.store %84, %arg4[%c0_37, %c0_38] : memref<1x1xf32, #tpu.memory_space<smem>>
    } else {
    }
    return
  }
  func.func @transform_0(%arg0: i32) -> i32 {
    %c0_i32 = arith.constant 0 : i32
    %c0_i32_0 = arith.constant 0 : i32
    return %c0_i32 : i32
  }
  func.func @transform_1(%arg0: i32) -> (i32, i32) {
    %c0_i32 = arith.constant 0 : i32
    %c0_i32_0 = arith.constant 0 : i32
    %c0_i32_1 = arith.constant 0 : i32
    return %c0_i32, %c0_i32_0 : i32, i32
  }
  func.func @transform_2(%arg0: i32) -> (i32, i32) {
    %c0_i32 = arith.constant 0 : i32
    %c0_i32_0 = arith.constant 0 : i32
    return %arg0, %c0_i32 : i32, i32
  }
  func.func @transform_3(%arg0: i32) -> (i32, i32) {
    %c0_i32 = arith.constant 0 : i32
    %c0_i32_0 = arith.constant 0 : i32
    %c0_i32_1 = arith.constant 0 : i32
    return %c0_i32, %c0_i32_0 : i32, i32
  }
}

</mosaic_0001>

<bundles_post_ra>
// kernel: tpu_custom_call.1
= control target key start
LH: loop header
LB: loop body
LE: loop exit
PB: predicated region body
PF: predicated region fallthrough
CT: control target
= control target key end

     0   :  { %s911_s0 = inlined_call_operand.<no memory space> [shape: f32[1], index: 0, kind: input, shape index: {}]   ;;  %s912_s1 = inlined_call_operand.hbm [shape: f32[16,32], index: 1, kind: input, shape index: {}]   ;;  %s913_s2 = inlined_call_operand.hbm [shape: f32[16,32], index: 2, kind: input, shape index: {}]   ;;  %s914_s3 = inlined_call_operand.hbm [shape: f32[1,1], index: 3, kind: output, shape index: {}]  }
   0x1   :  { %8 = sst [smem:[#allocation6]] %s911_s0 }
   0x2   :  { %9 = vsyncpa [#allocation8], 0 }
   0x3   :  { %10 = vsyncpa [#allocation11], 0 }
   0x4   :  { %12 = vsyncpa [#allocation11 + $0x1], 0 }
   0x5   :  { %13 = vsyncpa [#allocation9], 0  ;;  %s784_s14 = smov 0   ;;  %s786_s15 = smov 0  }
   0x6   :  { %s788_s16 = smov 0   ;;  %s790_s17 = smov 0  }
   0x7 LB: > { %s127_s19 = sshll.u32 %s912_s1, 4  ;;  %s806_s20 = sadd.s32 4294967295, %s749_s17   ;;  %s749_s17 = sphi %s790_s17, %s921_s17   ;;  %s745_s16 = sphi %s788_s16, %s920_s16   ;;  %s741_s15 = sphi %s786_s15, %s919_s15   ;;  %s737_s14 = sphi %s784_s14, %s918_s14   ;;  %s128_s19 = int_to_ptr.hbm [resolvable:$true] %s127_s19 }
   0x8   : > { %p522_p0 = scmp.ge.s32.totalorder %s749_s17, 1  ;;  %p82_p1 = scmp.eq.s32.totalorder %s806_s20, 0 }
   0x9   : > { %p113_p2 = scmp.lt.s32.totalorder %s749_s17, 3  ;;  %p523_p3 = scmp.ne.s32.totalorder %s806_s20, 0 }
   0xa   : > { %s751_s22 = smov [#allocation7]   ;;  %s752_s24 = smov 128  }
   0xb   : > { %p812_p4 = pnand %p522_p0, %p113_p2  ;;  %s129_s23 = sshll.u32 %s751_s22, 4  ;;  %s130_s23 = int_to_ptr.vmem [resolvable:$true] %s129_s23 }
   0xc   : > { %s753_s25 = smov 8   ;;  %s821_s26 = sadd.s32 1, %s749_s17  }
   0xd   : > { %p559_p5 = pneg %p812_p4  ;;  %s65_s27 = ssub.s32 %s749_s17, %s821_s26 }
   0xe   : > { %s68_s28 = sadd.s32 1, %s745_s16  ;;  %p66_p7 = scmp.eq.s32.totalorder %s65_s27, 0 }
   0xf   : > { %p560_p6 = pnand %p559_p5, %p82_p1  ;;  %p75_p8 = scmp.ne.s32.totalorder %s745_s16, %s741_s15 }
  0x10   : > { %p76_p9 = scmp.eq.s32.totalorder %s749_s17, 0  ;;  %p81_p10 = scmp.ne.s32.totalorder %s741_s15, %s737_s14 }
  0x11   : > { %562 = dma.hbm_to_vmem [thread:$0]  (!%p560_p6), %s128_s19, 256, %s130_s23, [#allocation8], %s752_s24, %s752_s24, %s753_s25  }
  0x12   : > { %s831_s29 = scalar_select %p66_p7, %s745_s16, %s68_s28  }
  0x13   : > { %p77_p11 = por %p76_p9, %p75_p8  ;;  %p835_p12 = por %p82_p1, %p81_p10 }
  0x14   : > { %p568_p13 = scmp.lt.s32.totalorder %s749_s17, 2  ;;  %s143_s4 = sand.u32 1, %s745_s16  }
  0x15   : > { %s525_s5 = sshll.u32 %s143_s4, 3  ;;  %s526_s6 = sshll.u32 %s749_s17, 3 }
  0x16   : > { %s151_s9 = scalar_lea.hbm %s913_s2, %s526_s6  ;;  %s147_s10 = scalar_lea.vmem [#allocation10], %s525_s5 }
  0x17   : > { %s155_s11 = sshll.u32 %s147_s10, 4  ;;  %s153_s12 = sshll.u32 %s151_s9, 4  ;;  %s156_s11 = int_to_ptr.vmem [resolvable:$true] %s155_s11  ;;  %s154_s12 = int_to_ptr.hbm [resolvable:$true] %s153_s12 }
  0x18   : > { %p845_p0 = pnand %p568_p13, %p77_p11  ;;  %s144_s14 = scalar_lea.sflag [#allocation11], %s143_s4 }
  0x19   : > { %s663_s0 = sshra.s32 %s154_s12, 4  ;;  %s670_s22 = scalar_lea.hbm %s913_s2, 16  ;;  %s664_s0 = int_to_ptr.hbm [resolvable:$true] %s663_s0 }
  0x1a   : > { %s665_s18 = scalar_lea.hbm %s664_s0, 8  ;;  %p667_p5 = pneg %p845_p0 }
  0x1b   : > { %p666_p2 = scmp.ne.s32.totalorder %s664_s0, %s665_s18  ;;  %p671_p8 = scmp.lt.s32.totalorder %s664_s0, %s913_s2 }
  0x1c   : > { %p672_p9 = scmp.lt.s32.totalorder %s670_s22, %s665_s18 }
  0x1d   : > { %p668_p6 = pnand %p667_p5, %p666_p2 }
  0x1e   : > { %p673_p10 = por %p672_p9, %p671_p8 }
  0x1f   : > { %p669_p7 = pneg %p668_p6 }
  0x21   : > { %p674_p11 = pnand %p673_p10, %p669_p7 }
  0x23   : > { %677 = shalt.err (!%p674_p11)
}
  0x24   : > { %566 = dma.hbm_to_vmem [thread:$0]  (!%p845_p0), %s154_s12, 128, %s156_s11, %s144_s14  }
  0x25   : > { %164 = sbr.rel (%p812_p4) target bundleno = 1285 (0x505), region = 32 }
  0x2a   : > { %724 = dma.done.wait (%p82_p1), [#allocation8], 256  }
  0x2b   : > { %726 = vsyncadd (%p82_p1), [#allocation8], 4294967040  ;;  %s171_s25 = sand.u32 1, %s741_s15  }
  0x2c   : > { %s866_s27 = sshll.u32 %s171_s25, 3  ;;  %s172_s28 = scalar_lea.sflag [#allocation11], %s171_s25 }
  0x2d   : > { %s175_s4 = scalar_lea.vmem [#allocation10], %s866_s27 }
  0x2e   : > { %728 = dma.done.wait (%p835_p12), %s172_s28, 128  }
  0x2f   : > { %730 = vsyncadd (%p835_p12), %s172_s28, 4294967168  ;;  %s194_s21 = sld [smem:[#allocation6]]  ;;  %s754_s5 = smov 100.0  }
  0x30   : > { %s755_s30 = smov (!%p523_p3), 0.0  }
  0x31   : > { %199 = sbr.rel (%p523_p3) target bundleno = 205 (0xcd), region = 44  ;;  %242 = sst [smem:[#allocation5]] (!%p523_p3), %s755_s30 }
  0x32   : > { %244 = sst [smem:[#allocation5 + $0x1]] (!%p523_p3), %s755_s30 }
  0x35   : > { %s873_s6 = smin.f32 %s754_s5, %s194_s21 }
  0x36   : > { %v200_v0 = vld [vmem:[#allocation7] sm:$0xff]  ;;  %vm204_vm0 = vcmask 261120   ;;  %v201_v2 = vld [vmem:[#allocation7 + $0x8] sm:$0xff]  ;;  %vm237_vm1 = vcmask 130048   ;;  %vm239_vm2 = vcmask 0   ;;  %v756_v6 = vmov 0.0  }
  0x37   : > { %v202_v1 = vmul.f32 %v200_v0, %v200_v0  ;;  %v203_v4 = vmul.f32 %v201_v2, %v201_v2  ;;  %238 = vst.msk [vmem:[#allocation3] sm:$0xff] %vm237_vm1, %v756_v6  ;;  %v757_v8 = vmov -3e+38  }
  0x38   : > { %240 = vst.msk [vmem:[#allocation4] sm:$0x1] %vm239_vm2, %v757_v8 }
  0x39   : > { %v205_v3 = vsel %vm204_vm0, %v202_v1, 0.0  ;;  %v208_v5 = vsel %vm204_vm0, %v203_v4, 0.0 }
  0x3a   : > { %206 = vadd.xlane.f32.xlu0 %v205_v3 }
  0x42   : > { %209 = vadd.xlane.f32.xlu0 %v208_v5 }
  0xad   : > { %v207_v7 = vpop.xlane.xlu0 %206 }
  0xae   : > { %v211_v9 = vmax.f32 %v207_v7, 1e-24 }
  0xb0   : > { %614 = vrsqrt.f32 %v211_v9  ;;  %vm219_vm4 = vweird.f32 %v211_v9 }
  0xb5   : > { %v210_v10 = vpop.xlane.xlu0 %209 }
  0xb6   : > { %v615_v11 = vpop.eup %614  ;;  %v212_v12 = vmax.f32 %v210_v10, 1e-24 }
  0xb7   : > { %v214_v13 = vmul.f32 %v615_v11, %v211_v9  ;;  %vm220_vm3 = vweird.f32 %v615_v11 }
  0xb8   : > { %616 = vrsqrt.f32 %v212_v12  ;;  %vm221_vm5 = vmor %vm219_vm4, %vm220_vm3  ;;  %vm229_vm7 = vweird.f32 %v212_v12 }
  0xb9   : > { %v215_v14 = vmul.f32 %v615_v11, %v214_v13 }
  0xbb   : > { %v216_v15 = vmul.f32 0.5, %v215_v14 }
  0xbd   : > { %v217_v16 = vsub.f32 1.5, %v216_v15 }
  0xbe   : > { %v617_v17 = vpop.eup %616 }
  0xbf   : > { %v218_v18 = vmul.f32 %v615_v11, %v217_v16  ;;  %v224_v19 = vmul.f32 %v617_v17, %v212_v12  ;;  %vm230_vm6 = vweird.f32 %v617_v17 }
  0xc0   : > { %vm231_vm8 = vmor %vm229_vm7, %vm230_vm6 }
  0xc1   : > { %v222_v20 = vsel %vm221_vm5, %v615_v11, %v218_v18  ;;  %v225_v21 = vmul.f32 %v617_v17, %v224_v19 }
  0xc2   : > { %v233_v22 = vmul.f32 %v222_v20, %v200_v0 }
  0xc3   : > { %v226_v23 = vmul.f32 0.5, %v225_v21 }
  0xc4   : > { %235 = vst.msk [vmem:[#allocation2] sm:$0xff] %vm204_vm0, %v233_v22 }
  0xc5   : > { %v227_v24 = vsub.f32 1.5, %v226_v23 }
  0xc7   : > { %v228_v25 = vmul.f32 %v617_v17, %v227_v24 }
  0xc9   : > { %v232_v26 = vsel %vm231_vm8, %v617_v17, %v228_v25 }
  0xca   : > { %v234_v27 = vmul.f32 %v232_v26, %v201_v2 }
  0xcc   : > { %236 = vst.msk [vmem:[#allocation2 + $0x8] sm:$0xff] %vm204_vm0, %v234_v27 }
  0xcd PF: > { %v245_v28 = vld [vmem:[%s175_s4] sm:$0xff]  ;;  %vm247_vm9 = vcmask 261120   ;;  %v265_v32 = vld [vmem:[#allocation2] sm:$0xff]  ;;  %s534_s7 = sshll.u32 %s806_s20, 3  ;;  %v262_v41 = vstv %s873_s6  ;;  %vm314_vm13 = vcmask 130048   ;;  %s535_s9 = sld [smem:[#allocation5 + $0x1]]  ;;  %v362_v15 = vlaneseq }
  0xce   : > { %v246_v29 = vmul.f32 %v245_v28, %v245_v28  ;;  %s297_s8 = scalar_lea.vmem [#allocation2], %s534_s7  ;;  %v758_v57 = vmov 0   ;;  %v342_v2 = vld [vmem:[#allocation4] sm:$0x1]  ;;  %vm350_vm14 = vcmask 0   ;;  %vm377_vm15 = vcmask 64512  }
  0xcf   : > { %619 = vset.pattern.permute.xlu0 %v758_v57  ;;  %618 = vset.pattern.permute.xlu1 %v758_v57  ;;  %v363_v16 = vand.u32 127, %v362_v15  ;;  %vm328_vm0 = vcmask 7168   ;;  %v400_v24 = vld [vmem:[#allocation3] sm:$0xff]  ;;  %s327_s12 = sld [smem:[#allocation5]]  ;;  %p537_p1 = scmp.ne.s32.totalorder %s806_s20, 1 }
  0xd0   : > { %v248_v30 = vsel %vm247_vm9, %v246_v29, 0.0 }
  0xd1   : > { %249 = vadd.xlane.f32.xlu0 %v248_v30 }
  0xd3   : > { %v266_v31 = vld [vmem:[#allocation2 + $0x8] sm:$0xff]  ;;  %v298_v44 = vld [vmem:[%s297_s8] sm:$0xff] }
  0xd4   : > { %531 = vmatpush.xpose.msk.msra.mxu0 %vm247_vm9, %v266_v31 }
  0xd8   : > { %532 = vmatpush.xpose.msk.msra.mxu0 %vm247_vm9, %v265_v32 }
 0x144   : > { %v250_v33 = vpop.xlane.xlu0 %249 }
 0x145   : > { %v251_v34 = vmax.f32 %v250_v33, 1e-24 }
 0x147   : > { %620 = vrsqrt.f32 %v251_v34  ;;  %vm258_vm11 = vweird.f32 %v251_v34 }
 0x14d   : > { %v621_v35 = vpop.eup %620 }
 0x14e   : > { %v253_v36 = vmul.f32 %v621_v35, %v251_v34  ;;  %vm259_vm10 = vweird.f32 %v621_v35 }
 0x14f   : > { %vm260_vm12 = vmor %vm258_vm11, %vm259_vm10 }
 0x150   : > { %v254_v37 = vmul.f32 %v621_v35, %v253_v36 }
 0x152   : > { %v255_v38 = vmul.f32 0.5, %v254_v37 }
 0x154   : > { %v256_v39 = vsub.f32 1.5, %v255_v38 }
 0x156   : > { %v257_v40 = vmul.f32 %v621_v35, %v256_v39 }
 0x158   : > { %v261_v42 = vsel %vm260_vm12, %v621_v35, %v257_v40 }
 0x159   : > { %v263_v43 = vmul.f32 %v262_v41, %v261_v42 }
 0x15b   : > { %v264_v45 = vmul.f32 %v263_v43, %v245_v28 }
 0x15d   : > { %533 = vmatmul.msk.f32.vlgmr.msra.gmra.mxu0 %vm247_vm9, %v264_v45  ;;  %v300_v46 = vmul.f32 %v298_v44, %v264_v45 }
 0x15f   : > { %v301_v47 = vsel %vm247_vm9, %v300_v46, 0.0 }
 0x160   : > { %302 = vadd.xlane.f32.xlu2 %v301_v47 }
 0x1d3   : > { %v303_v48 = vpop.xlane.xlu2 %302 }
 0x1d4   : > { %v304_v49 = vrot.slane %v303_v48, 4 }
 0x1d6   : > { %v305_v50 = vadd.f32 %v304_v49, %v303_v48 }
 0x1d8   : > { %v306_v51 = vrot.slane %v305_v50, 2 }
 0x1da   : > { %v293_v52 = vpop.f32.mrf.mxu0  ;;  %v307_v53 = vadd.f32 %v306_v51, %v305_v50 }
 0x1db   : > { %v315_v54 = vsel %vm314_vm13, %v293_v52, -inf }
 0x1dc   : > { %316 = vmax.xlane.f32.xlu0 %v315_v54  ;;  %v308_v55 = vrot.slane %v307_v53, 1 }
 0x1de   : > { %v309_v56 = vadd.f32 %v308_v55, %v307_v53 }
 0x1e0   : > { %543 = vpush %v309_v56 }
 0x211   : > { %s544_s10 = spop %543 }
 0x212   : > { %s311_s11 = sadd.f32 %s544_s10, %s535_s9 }
 0x214   : > { %313 = sst [smem:[#allocation5 + $0x1]] %s311_s11 }
 0x215   : > { %s538_s0 = sld [smem:[#allocation5 + $0x1]] (!%p537_p1) }
 0x24f   : > { %v317_v58 = vpop.xlane.xlu0 %316 }
 0x250   : > { %v343_v59 = vrot.slane %v317_v58, 4  ;;  %v318_v60 = vsub.f32 %v293_v52, %v317_v58 }
 0x252   : > { %v344_v61 = vmax.f32 %v317_v58, %v343_v59  ;;  %v319_v62 = vmul.f32 1.442695, %v318_v60 }
 0x254   : > { %v345_v63 = vrot.slane %v344_v61, 2  ;;  %622 = vpow2.f32 %v319_v62 }
 0x256   : > { %v346_v0 = vmax.f32 %v344_v61, %v345_v63 }
 0x258   : > { %v347_v1 = vrot.slane %v346_v0, 1 }
 0x25a   : > { %v623_v3 = vpop.eup %622  ;;  %v348_v4 = vmax.f32 %v346_v0, %v347_v1 }
 0x25b   : > { %395 = vmatpush.msra.mxu1 %v623_v3  ;;  %v321_v14 = vsel %vm314_vm13, %v623_v3, 0.0 }
 0x25c   : > { %v349_v5 = vmax.f32 %v342_v2, %v348_v4 }
 0x25e   : > { %v401_v6 = vsub.f32 %v342_v2, %v349_v5  ;;  %351 = vst.msk [vmem:[#allocation4] sm:$0x1] %vm350_vm14, %v349_v5  ;;  %v353_v7 = vperm.slane %v349_v5, 0 }
 0x260   : > { %v402_v8 = vmul.f32 1.442695, %v401_v6  ;;  %v355_v9 = vsub.f32 %v317_v58, %v353_v7 }
 0x262   : > { %624 = vpow2.f32 %v402_v8  ;;  %v356_v10 = vmul.f32 1.442695, %v355_v9 }
 0x264   : > { %626 = vpow2.f32 %v356_v10 }
 0x268   : > { %v625_v11 = vpop.eup %624 }
 0x269   : > { %v405_v12 = vperm.slane %v625_v11, 0 }
 0x26a   : > { %v627_v13 = vpop.eup %626 }
 0x26b   : > { %407 = vperm.xlu0 %619, %v405_v12   ;;  %360 = vperm.xlu1 %618, %v627_v13  }
 0x295   : > { %322 = vadd.xlane.f32.xlu1 %v321_v14 }
 0x2dd   : > { %v361_v17 = vpop.permute.xlu1 %360  ;;  %v408_v25 = vpop.permute.xlu0 %407 }
 0x2de   : > { %v364_v18 = vperm.slane %v361_v17, %v363_v16  ;;  %v410_v26 = vmul.f32 %v408_v25, %v400_v24 }
 0x2e0   : > { %536 = vmatmul.msk.f32.vlgmr.msra.gmra.mxu1 %vm377_vm15, %v364_v18 }
 0x308   : > { %v323_v19 = vpop.xlane.xlu1 %322 }
 0x309   : > { %628 = vlog2.f32 %v323_v19 }
 0x30f   : > { %v629_v20 = vpop.eup %628 }
 0x310   : > { %v325_v21 = vmul.f32 0.6931472, %v629_v20 }
 0x312   : > { %v326_v22 = vadd.f32 %v325_v21, %v317_v58 }
 0x314   : > { %v329_v23 = vsel %vm328_vm0, %v326_v22, 0.0 }
 0x315   : > { %330 = vadd.xlane.f32.xlu2 %v329_v23 }
 0x35d   : > { %v397_v27 = vpop.f32.mrf.mxu1 }
 0x35e   : > { %v411_v28 = vadd.f32 %v410_v26, %v397_v27 }
 0x360   : > { %412 = vst.msk [vmem:[#allocation3] sm:$0xff] %vm314_vm13, %v411_v28 }
 0x388   : > { %v331_v29 = vpop.xlane.xlu2 %330 }
 0x389   : > { %v332_v30 = vrot.slane %v331_v29, 4 }
 0x38b   : > { %v333_v31 = vadd.f32 %v332_v30, %v331_v29 }
 0x38d   : > { %v334_v32 = vrot.slane %v333_v31, 2 }
 0x38f   : > { %v335_v33 = vadd.f32 %v334_v32, %v333_v31 }
 0x391   : > { %v336_v34 = vrot.slane %v335_v33, 1 }
 0x393   : > { %v337_v35 = vadd.f32 %v336_v34, %v335_v33 }
 0x395   : > { %545 = vpush %v337_v35 }
 0x3c5   : > { %416 = sbr.rel (%p537_p1) target bundleno = 1279 (0x4ff), region = 48 }
 0x3c6   : > { %s546_s13 = spop %545 }
 0x3c7   : > { %s339_s14 = sadd.f32 %s546_s13, %s327_s12 }
 0x3c9   : > { %341 = sst [smem:[#allocation5]] %s339_s14 }
 0x3ca   : > { %v417_v36 = vld [vmem:[#allocation4] sm:$0x1]  ;;  %v759_v37 = vmov 0   ;;  %v418_v38 = vld [vmem:[#allocation3] sm:$0x1]  ;;  %vm428_vm1 = vcmask 122880  }
 0x3cb   : > { %630 = vset.pattern.permute.xlu0 %v759_v37  ;;  %631 = vlog2.f32 %v418_v38  ;;  %s440_s18 = sld [smem:[#allocation5]] }
 0x3cc   : > { %423 = vperm.xlu0 %630, %v417_v36  }
 0x3d1   : > { %v632_v39 = vpop.eup %631  ;;  %s441_s17 = ssub.f32 %s440_s18, %s538_s0 }
 0x3d2   : > { %v420_v40 = vmul.f32 0.6931472, %v632_v39 }
 0x3d3   : > { %s442_s22 = smul.f32 0.0625, %s441_s17 }
 0x43e   : > { %v424_v41 = vpop.permute.xlu0 %423 }
 0x43f   : > { %v426_v42 = vperm.slane %v424_v41, 0 }
 0x441   : > { %v427_v43 = vadd.f32 %v426_v42, %v420_v40 }
 0x443   : > { %v429_v44 = vsel %vm428_vm1, %v427_v43, 0.0 }
 0x444   : > { %430 = vadd.xlane.f32.xlu0 %v429_v44 }
 0x4b7   : > { %v431_v45 = vpop.xlane.xlu0 %430 }
 0x4b8   : > { %v432_v46 = vrot.slane %v431_v45, 4 }
 0x4ba   : > { %v433_v47 = vadd.f32 %v432_v46, %v431_v45 }
 0x4bc   : > { %v434_v48 = vrot.slane %v433_v47, 2 }
 0x4be   : > { %v435_v49 = vadd.f32 %v434_v48, %v433_v47 }
 0x4c0   : > { %v436_v50 = vrot.slane %v435_v49, 1 }
 0x4c2   : > { %v437_v51 = vadd.f32 %v436_v50, %v435_v49 }
 0x4c4   : > { %547 = vpush %v437_v51 }
 0x4f5   : > { %s548_s19 = spop %547 }
 0x4f6   : > { %s443_s23 = ssub.f32 %s548_s19, %s538_s0 }
 0x4f8   : > { %s444_s24 = smul.f32 0.0625, %s443_s23 }
 0x4fa   : > { %s445_s25 = sadd.f32 %s444_s24, %s442_s22 }
 0x4fc   : > { %s446_s27 = smul.f32 0.5, %s445_s25 }
 0x4fe   : > { %448 = sst [smem:[#allocation12]] %s446_s27 }
 0x4ff PF: > { %p570_p3 = scmp.eq.s32.totalorder %s806_s20, 1  ;;  %s455_s21 = sshll.u32 %s914_s3, 4  ;;  %s456_s21 = int_to_ptr.hbm [resolvable:$true] %s455_s21 }
 0x500   : > { %s760_s5 = smov [#allocation12]  }
 0x501   : > { %556 = dma.smem_to_hbm (%p570_p3), %s760_s5, 16, %s456_s21, [#allocation9]  }
 0x502   : > { %732 = dma.done.wait (%p570_p3), [#allocation9], 16  }
 0x503   : > { %734 = vsyncadd (%p570_p3), [#allocation9], 4294967280 }
 0x504   : > { %464 = sfence }
 0x505 PF: > { %p16_p4 = scmp.ge.s32.totalorder %s821_s26, 4   ;;  %s918_s14 = smov %s741_s15 }
 0x506   : > { %s919_s15 = smov %s745_s16  ;;  %s920_s16 = smov %s831_s29 }
 0x507   : > { %s921_s17 = smov %s821_s26  ;;  %18 = sbr.rel (!%p16_p4) target bundleno = 7 (0x7), region = 88 }
 0x50c   :  { %470 = vsyncpa [#allocation8], 1 }
 0x50d   :  { %472 = vsyncpa [#allocation8 + $0x1], 1 }
 0x50e   :  { %473 = vsyncpa [#allocation11], 1 }
 0x50f   :  { %475 = vsyncpa [#allocation11 + $0x1], 1 }
 0x510   :  { %476 = vsyncpa [#allocation9], 1 }
 0x511   :  { %478 = vsyncpa [#allocation9 + $0x1], 1 }

</bundles_post_ra>
